<compile_context>
chip_gen: v7x
topology: tpu7x:2x2x1
jax: 0.10.0
libtpu: 0.0.40
codegen_flags: <defaults>
</compile_context>

<pallas_src>
import jax
import jax.numpy as jnp
from jax.experimental import pallas as pl
from jax.experimental.pallas import tpu as pltpu

ALPHA = 0.25          # matches WeightedFocalLoss(alpha=0.25)
# gamma == 2 is baked in below as an explicit square.

_LANE = 128
_MAX_TILE_ROWS = 1024     # (1024, 128) f32 block = 512 KiB
_NUM_PARTITIONS = 2       # leading "parallel" grid axis (both TCs on v7x)


def _make_kernel(n, tile_rows, blocks_per_part):
    block_elems = tile_rows * _LANE

    def kernel(x_ref, t_ref, out_ref, acc_ref):
        p = pl.program_id(0)          # parallel partition
        i = pl.program_id(1)          # streaming / reduction axis

        @pl.when(i == 0)
        def _():
            acc_ref[...] = jnp.zeros_like(acc_ref)

        x = x_ref[...].astype(jnp.float32)
        t = t_ref[...].astype(jnp.float32)

        # binary_cross_entropy_with_logits, reduction='none' (stable form):
        #   bce = max(x, 0) - x*t + log1p(exp(-|x|))
        bce = jnp.maximum(x, 0.0) - x * t + jnp.log1p(jnp.exp(-jnp.abs(x)))

        # at = alpha.gather(0, targets.long()) with alpha = [ALPHA, 1-ALPHA];
        # targets.long() truncates, so index 1 <=> t >= 1.
        at = jnp.where(t >= 1.0, 1.0 - ALPHA, ALPHA)

        pt = jnp.exp(-bce)
        q = 1.0 - pt
        f_loss = at * (q * q) * bce   # gamma == 2 -> explicit square, no pow

        # In-kernel tail mask (no mask array streamed from HBM).
        block_idx = p * blocks_per_part + i
        row = jax.lax.broadcasted_iota(jnp.int32, (tile_rows, _LANE), 0)
        lane = jax.lax.broadcasted_iota(jnp.int32, (tile_rows, _LANE), 1)
        gidx = block_idx * block_elems + row * _LANE + lane
        acc_ref[...] += jnp.where(gidx < n, f_loss, 0.0)

        @pl.when(i == pl.num_programs(1) - 1)
        def _():
            out_ref[...] = jnp.sum(acc_ref[...], keepdims=True)

    return kernel


@jax.jit
def weighted_focal_loss(inputs, targets):
    """JAX/Pallas equivalent of WeightedFocalLoss().forward(inputs, targets)."""
    n = inputs.size
    x = inputs.reshape(-1)
    t = targets.reshape(-1)

    # Largest useful block: up to 1024 rows of 128 lanes, rounded to a
    # multiple of 16 rows (safe sublane tiling for both f32 and bf16).
    rows_needed = -(-n // _LANE)
    tile_rows = min(_MAX_TILE_ROWS, ((rows_needed + 15) // 16) * 16)
    block_elems = tile_rows * _LANE

    nblocks = -(-n // block_elems)
    num_parts = _NUM_PARTITIONS if nblocks >= _NUM_PARTITIONS else 1
    blocks_per_part = -(-nblocks // num_parts)
    total_blocks = blocks_per_part * num_parts
    n_pad = total_blocks * block_elems

    pad = n_pad - n            # static (shape-derived)
    if pad:                    # skipped entirely when already block-aligned
        x = jnp.pad(x, (0, pad))
        t = jnp.pad(t, (0, pad))
    # TODO(synk): for very large ragged N, a memory_space=pl.ANY manual-DMA
    # path would avoid this wrapper-side pad copy entirely.

    rows = n_pad // _LANE
    x2 = x.reshape(rows, _LANE)
    t2 = t.reshape(rows, _LANE)

    blk = pl.BlockSpec((tile_rows, _LANE),
                       lambda p, i: (p * blocks_per_part + i, 0))

    partials = pl.pallas_call(
        _make_kernel(n, tile_rows, blocks_per_part),
        out_shape=jax.ShapeDtypeStruct((num_parts, 1), jnp.float32),
        grid_spec=pltpu.PrefetchScalarGridSpec(
            num_scalar_prefetch=0,
            grid=(num_parts, blocks_per_part),
            in_specs=[blk, blk],
            out_specs=pl.BlockSpec((1, 1), lambda p, i: (p, 0)),
            scratch_shapes=[pltpu.VMEM((tile_rows, _LANE), jnp.float32)],
        ),
        compiler_params=pltpu.CompilerParams(
            dimension_semantics=("parallel", "arbitrary")),
    )(x2, t2)

    # F_loss.mean() over the original (unpadded) N elements.
    return jnp.sum(partials) / jnp.float32(n)


def _reference(inputs, targets):
    x = inputs.reshape(-1).astype(jnp.float32)
    t = targets.reshape(-1).astype(jnp.float32)
    bce = jnp.maximum(x, 0.0) - x * t + jnp.log1p(jnp.exp(-jnp.abs(x)))
    at = jnp.where(t >= 1.0, 1.0 - ALPHA, ALPHA)
    pt = jnp.exp(-bce)
    return jnp.mean(at * (1.0 - pt) ** 2 * bce)


if __name__ == "__main__":
    key = jax.random.PRNGKey(0)
    k1, k2 = jax.random.split(key)

    N = 500  # deliberately not tile-aligned to exercise the in-kernel mask
    logits = jax.random.normal(k1, (N,), dtype=jnp.float32) * 2.0
    labels = (jax.random.uniform(k2, (N,)) > 0.5).astype(jnp.float32)

    loss = weighted_focal_loss(logits, labels)
    loss = jax.block_until_ready(loss)

    ref = _reference(logits, labels)
    assert jnp.allclose(loss, ref, rtol=1e-5, atol=1e-6), (loss, ref)

    print("KERNEL_OK")
</pallas_src>

<mosaic_0001>
module attributes {stable_mosaic.version = 11 : i64} {
  func.func @kernel(%arg0: i32, %arg1: i32, %arg2: memref<16x128xf32, #tpu.memory_space<vmem>>, %arg3: memref<16x128xf32, #tpu.memory_space<vmem>>, %arg4: memref<1x1xf32, #tpu.memory_space<vmem>>, %arg5: memref<16x128xf32, #tpu.memory_space<vmem>>) attributes {dimension_semantics = [#tpu.dimension_semantics<parallel>, #tpu.dimension_semantics<arbitrary>], iteration_bounds = array<i64: 1, 1>, scalar_prefetch = 0 : i64, scratch_operands = 1 : i64, tpu.core_type = #tpu.core_type<tc>, window_params = [{transform_indices = @transform_0, window_bounds = array<i64: 16, 128>}, {transform_indices = @transform_1, window_bounds = array<i64: 16, 128>}, {transform_indices = @transform_2, window_bounds = array<i64: 1, 1>}]} {
    %c0_i32 = arith.constant 0 : i32
    %0 = arith.cmpi eq, %arg1, %c0_i32 : i32
    %1 = arith.extui %0 : i1 to i32
    %c0_i32_0 = arith.constant 0 : i32
    %2 = arith.cmpi ne, %1, %c0_i32_0 : i32
    scf.if %2 {
      %cst_17 = arith.constant 0.000000e+00 : f32
      %48 = vector.broadcast %cst_17 : f32 to vector<16x128xf32>
      %c0_18 = arith.constant 0 : index
      %c0_19 = arith.constant 0 : index
      %49 = vector.load %arg5[%c0_18, %c0_19] : memref<16x128xf32, #tpu.memory_space<vmem>>, vector<16x128xf32>
      tpu.vector_store %arg5[%c0_18, %c0_19], %48 {strides = array<i32>} : memref<16x128xf32, #tpu.memory_space<vmem>>, vector<16x128xf32>,
    } else {
    }
    %c0 = arith.constant 0 : index
    %c0_1 = arith.constant 0 : index
    %3 = vector.load %arg2[%c0, %c0_1] : memref<16x128xf32, #tpu.memory_space<vmem>>, vector<16x128xf32>
    %c0_2 = arith.constant 0 : index
    %c0_3 = arith.constant 0 : index
    %4 = vector.load %arg3[%c0_2, %c0_3] : memref<16x128xf32, #tpu.memory_space<vmem>>, vector<16x128xf32>
    %cst = arith.constant 0.000000e+00 : f32
    %5 = vector.broadcast %cst : f32 to vector<16x128xf32>
    %6 = arith.maximumf %3, %5 : vector<16x128xf32>
    %7 = arith.mulf %3, %4 : vector<16x128xf32>
    %8 = arith.subf %6, %7 : vector<16x128xf32>
    %9 = math.absf %3 : vector<16x128xf32>
    %cst_4 = arith.constant 0.000000e+00 : f32
    %10 = vector.broadcast %cst_4 : f32 to vector<16x128xf32>
    %11 = arith.subf %10, %9 : vector<16x128xf32>
    %12 = math.exp %11 : vector<16x128xf32>
    %13 = math.log1p %12 : vector<16x128xf32>
    %14 = arith.addf %8, %13 : vector<16x128xf32>
    %cst_5 = arith.constant 1.000000e+00 : f32
    %15 = vector.broadcast %cst_5 : f32 to vector<16x128xf32>
    %16 = arith.cmpf oge, %4, %15 : vector<16x128xf32>
    %cst_6 = arith.constant 7.500000e-01 : f32
    %cst_7 = arith.constant 2.500000e-01 : f32
    %17 = vector.broadcast %cst_6 : f32 to vector<16x128xf32>
    %18 = vector.broadcast %cst_7 : f32 to vector<16x128xf32>
    %19 = arith.select %16, %17, %18 : vector<16x128xi1>, vector<16x128xf32>
    %cst_8 = arith.constant 0.000000e+00 : f32
    %20 = vector.broadcast %cst_8 : f32 to vector<16x128xf32>
    %21 = arith.subf %20, %14 : vector<16x128xf32>
    %22 = math.exp %21 : vector<16x128xf32>
    %cst_9 = arith.constant 1.000000e+00 : f32
    %23 = vector.broadcast %cst_9 : f32 to vector<16x128xf32>
    %24 = arith.subf %23, %22 : vector<16x128xf32>
    %25 = arith.mulf %24, %24 : vector<16x128xf32>
    %26 = arith.mulf %19, %25 : vector<16x128xf32>
    %27 = arith.mulf %26, %14 : vector<16x128xf32>
    %c1_i32 = arith.constant 1 : i32
    %28 = arith.muli %arg0, %c1_i32 : i32
    %29 = arith.addi %28, %arg1 : i32
    %30 = tpu.iota {dimensions = array<i32: 0>} : vector<16x128xi32>
    %31 = tpu.iota {dimensions = array<i32: 1>} : vector<16x128xi32>
    %c2048_i32 = arith.constant 2048 : i32
    %32 = arith.muli %29, %c2048_i32 : i32
    %c128_i32 = arith.constant 128 : i32
    %33 = vector.broadcast %c128_i32 : i32 to vector<16x128xi32>
    %34 = arith.muli %30, %33 : vector<16x128xi32>
    %35 = vector.broadcast %32 : i32 to vector<16x128xi32>
    %36 = arith.addi %35, %34 : vector<16x128xi32>
    %37 = arith.addi %36, %31 : vector<16x128xi32>
    %c0_10 = arith.constant 0 : index
    %c0_11 = arith.constant 0 : index
    %38 = vector.load %arg5[%c0_10, %c0_11] : memref<16x128xf32, #tpu.memory_space<vmem>>, vector<16x128xf32>
    %c500_i32 = arith.constant 500 : i32
    %39 = vector.broadcast %c500_i32 : i32 to vector<16x128xi32>
    %40 = arith.cmpi slt, %37, %39 : vector<16x128xi32>
    %cst_12 = arith.constant 0.000000e+00 : f32
    %41 = vector.broadcast %cst_12 : f32 to vector<16x128xf32>
    %42 = arith.select %40, %27, %41 : vector<16x128xi1>, vector<16x128xf32>
    %43 = arith.addf %38, %42 : vector<16x128xf32>
    %c0_13 = arith.constant 0 : index
    %c0_14 = arith.constant 0 : index
    %44 = vector.load %arg5[%c0_13, %c0_14] : memref<16x128xf32, #tpu.memory_space<vmem>>, vector<16x128xf32>
    tpu.vector_store %arg5[%c0_13, %c0_14], %43 {strides = array<i32>} : memref<16x128xf32, #tpu.memory_space<vmem>>, vector<16x128xf32>,
    %c0_i32_15 = arith.constant 0 : i32
    %45 = arith.cmpi eq, %arg1, %c0_i32_15 : i32
    %46 = arith.extui %45 : i1 to i32
    %c0_i32_16 = arith.constant 0 : i32
    %47 = arith.cmpi ne, %46, %c0_i32_16 : i32
    scf.if %47 {
      %c0_17 = arith.constant 0 : index
      %c0_18 = arith.constant 0 : index
      %48 = vector.load %arg5[%c0_17, %c0_18] : memref<16x128xf32, #tpu.memory_space<vmem>>, vector<16x128xf32>
      %49 = vector.shape_cast %48 : vector<16x128xf32> to vector<1x16x128xf32>
      %cst_19 = arith.constant dense<0.000000e+00> : vector<1xf32>
      %50 = vector.multi_reduction <add>, %49, %cst_19 [1, 2] : vector<1x16x128xf32> to vector<1xf32>
      %51 = vector.shape_cast %50 : vector<1xf32> to vector<1x1x1xf32>
      %52 = vector.extract %51[0, 0, 0] : f32 from vector<1x1x1xf32>
      %53 = vector.broadcast %52 : f32 to vector<1x1xf32>
      %c0_20 = arith.constant 0 : index
      %c0_21 = arith.constant 0 : index
      %54 = vector.load %arg4[%c0_20, %c0_21] : memref<1x1xf32, #tpu.memory_space<vmem>>, vector<1x1xf32>
      tpu.vector_store %arg4[%c0_20, %c0_21], %53 {strides = array<i32>} : memref<1x1xf32, #tpu.memory_space<vmem>>, vector<1x1xf32>,
    } else {
    }
    return
  }
  func.func @transform_0(%arg0: i32, %arg1: i32) -> (i32, i32) {
    %c1_i32 = arith.constant 1 : i32
    %0 = arith.muli %arg0, %c1_i32 : i32
    %1 = arith.addi %0, %arg1 : i32
    %c0_i32 = arith.constant 0 : i32
    %c0_i32_0 = arith.constant 0 : i32
    return %1, %c0_i32 : i32, i32
  }
  func.func @transform_1(%arg0: i32, %arg1: i32) -> (i32, i32) {
    %c1_i32 = arith.constant 1 : i32
    %0 = arith.muli %arg0, %c1_i32 : i32
    %1 = arith.addi %0, %arg1 : i32
    %c0_i32 = arith.constant 0 : i32
    %c0_i32_0 = arith.constant 0 : i32
    return %1, %c0_i32 : i32, i32
  }
  func.func @transform_2(%arg0: i32, %arg1: i32) -> (i32, i32) {
    %c0_i32 = arith.constant 0 : i32
    %c0_i32_0 = arith.constant 0 : i32
    return %arg0, %c0_i32 : i32, i32
  }
}

</mosaic_0001>

<bundles_post_ra>
// kernel: weighted_focal_loss.1
= control target key start
LH: loop header
LB: loop body
LE: loop exit
PB: predicated region body
PF: predicated region fallthrough
CT: control target
= control target key end

     0   :  { %s267_s0 = inlined_call_operand.vmem [shape: f32[16,128], index: 0, kind: input, shape index: {}]   ;;  %s268_s1 = inlined_call_operand.vmem [shape: f32[16,128], index: 1, kind: input, shape index: {}]   ;;  %s269_s2 = inlined_call_operand.hbm [shape: f32[1,1], index: 2, kind: output, shape index: {}]  }
   0x1   :  { %v62_v0 = vld [vmem:[%s267_s0] sm:$0xff]  ;;  %v63_v1 = vld [vmem:[%s267_s0 + $0x8] sm:$0xff] }
   0x2   :  { %v72_v2 = vand.u32 2147483647, %v62_v0  ;;  %v73_v3 = vand.u32 2147483647, %v63_v1 }
   0x3   :  { %7 = vsyncpa [#allocation4], 0  ;;  %v64_v14 = vld [vmem:[%s268_s1] sm:$0xff]  ;;  %v65_v15 = vld [vmem:[%s268_s1 + $0x8] sm:$0xff]  ;;  %v66_v17 = vmax.f32 %v62_v0, 0.0  ;;  %v67_v21 = vmax.f32 %v63_v1, 0.0  ;;  %v119_v38 = vlaneseq }
   0x4   :  { %v74_v4 = vsub.f32 0.0, %v72_v2  ;;  %v75_v5 = vsub.f32 0.0, %v73_v3  ;;  %v68_v18 = vmul.f32 %v64_v14, %v62_v0  ;;  %v69_v22 = vmul.f32 %v65_v15, %v63_v1  ;;  %s227_s1 = smov [#allocation3]  }
   0x5   :  { %v120_v41 = vshrl.u32 %v119_v38, 7  ;;  %v123_v43 = vand.u32 127, %v119_v38  ;;  %vm100_vm2 = vcmp.ge.f32.partialorder %v64_v14, 1.0  ;;  %vm101_vm3 = vcmp.ge.f32.partialorder %v65_v15, 1.0  ;;  %s166_s16 = sshll.u32 %s227_s1, 4  ;;  %s167_s16 = int_to_ptr.vmem [resolvable:$true] %s166_s16 }
   0x6   :  { %v76_v6 = vmul.f32 1.442695, %v74_v4  ;;  %v78_v7 = vmul.f32 1.442695, %v75_v5  ;;  %v70_v26 = vsub.f32 %v66_v17, %v68_v18  ;;  %v71_v29 = vsub.f32 %v67_v21, %v69_v22  ;;  %s202_s18 = scalar_lea.vmem %s167_s16, 16  ;;  %s206_s19 = scalar_lea.vmem %s167_s16, 32 }
   0x7   :  { %v121_v42 = vadd.s32 8, %v120_v41  ;;  %v125_v44 = vmul.u32 128, %v120_v41  ;;  %v226_v49 = vmov 0.25   ;;  %vm158_vm6 = vcmask 0   ;;  %p203_p0 = scmp.ne.s32.totalorder %s167_s16, %s202_s18  ;;  %p207_p1 = scmp.lt.s32.totalorder %s167_s16, %s167_s16 }
   0x8   :  { %190 = vpow2.f32 %v76_v6  ;;  %v102_v50 = vsel %vm100_vm2, 0.75, %v226_v49  ;;  %v103_v53 = vsel %vm101_vm3, 0.75, %v226_v49  ;;  %p208_p2 = scmp.lt.s32.totalorder %s206_s19, %s202_s18 }
   0x9   :  { %192 = vpow2.f32 %v78_v7  ;;  %v126_v45 = vmul.u32 128, %v121_v42  ;;  %v130_v52 = vadd.s32 %v125_v44, %v123_v43 }
   0xa   :  { %p209_p3 = por %p208_p2, %p207_p1 }
   0xb   :  { %v131_v55 = vadd.s32 %v126_v45, %v123_v43  ;;  %vm134_vm4 = vcmp.lt.s32.totalorder %v130_v52, 500 }
   0xc   :  { %p210_p4 = pnand %p209_p3, %p203_p0 }
   0xd   :  { %vm135_vm5 = vcmp.lt.s32.totalorder %v131_v55, 500 }
  0x12   :  { %v191_v8 = vpop.eup %190 }
  0x13   :  { %v193_v9 = vpop.eup %192  ;;  %v80_v10 = vadd.f32 1.0, %v191_v8  ;;  %v83_v12 = vmul.f32 -0.5, %v191_v8  ;;  %v86_v19 = vand.u32 2147483647, %v191_v8 }
  0x14   :  { %v89_v11 = vadd.f32 1.0, %v193_v9  ;;  %v92_v13 = vmul.f32 -0.5, %v193_v9  ;;  %v95_v23 = vand.u32 2147483647, %v193_v9 }
  0x15   :  { %194 = vlog2.f32 %v80_v10  ;;  %v84_v16 = vadd.f32 1.0, %v83_v12  ;;  %vm87_vm0 = vcmp.lt.f32.partialorder %v86_v19, 0.0004427343 }
  0x16   :  { %196 = vlog2.f32 %v89_v11  ;;  %v93_v20 = vadd.f32 1.0, %v92_v13  ;;  %vm96_vm1 = vcmp.lt.f32.partialorder %v95_v23, 0.0004427343 }
  0x17   :  { %v85_v24 = vmul.f32 %v191_v8, %v84_v16 }
  0x18   :  { %v94_v27 = vmul.f32 %v193_v9, %v93_v20 }
  0x1f   :  { %v195_v25 = vpop.eup %194 }
  0x20   :  { %v197_v28 = vpop.eup %196  ;;  %v82_v30 = vmul.f32 0.6931472, %v195_v25 }
  0x21   :  { %v91_v31 = vmul.f32 0.6931472, %v197_v28 }
  0x22   :  { %v88_v32 = vsel %vm87_vm0, %v85_v24, %v82_v30 }
  0x23   :  { %v97_v33 = vsel %vm96_vm1, %v94_v27, %v91_v31  ;;  %v98_v34 = vadd.f32 %v88_v32, %v70_v26 }
  0x24   :  { %v99_v35 = vadd.f32 %v97_v33, %v71_v29 }
  0x25   :  { %v104_v36 = vsub.f32 0.0, %v98_v34 }
  0x26   :  { %v105_v37 = vsub.f32 0.0, %v99_v35 }
  0x27   :  { %v106_v39 = vmul.f32 1.442695, %v104_v36 }
  0x28   :  { %v108_v40 = vmul.f32 1.442695, %v105_v37 }
  0x29   :  { %198 = vpow2.f32 %v106_v39 }
  0x2a   :  { %200 = vpow2.f32 %v108_v40 }
  0x33   :  { %v199_v46 = vpop.eup %198 }
  0x34   :  { %v201_v47 = vpop.eup %200  ;;  %v110_v48 = vsub.f32 1.0, %v199_v46 }
  0x35   :  { %v111_v51 = vsub.f32 1.0, %v201_v47 }
  0x36   :  { %v112_v54 = vmul.f32 %v110_v48, %v110_v48 }
  0x37   :  { %v113_v56 = vmul.f32 %v111_v51, %v111_v51 }
  0x38   :  { %v114_v57 = vmul.f32 %v112_v54, %v102_v50 }
  0x39   :  { %v115_v58 = vmul.f32 %v113_v56, %v103_v53 }
  0x3a   :  { %v116_v59 = vmul.f32 %v114_v57, %v98_v34 }
  0x3b   :  { %v117_v60 = vmul.f32 %v115_v58, %v99_v35 }
  0x3c   :  { %v136_v61 = vsel %vm134_vm4, %v116_v59, 0.0 }
  0x3d   :  { %v137_v62 = vsel %vm135_vm5, %v117_v60, 0.0 }
  0x3e   :  { %v147_v63 = vadd.f32 %v137_v62, %v136_v61 }
  0x40   :  { %148 = vadd.xlane.f32.xlu0 %v147_v63 }
  0xcd   :  { %v149_v0 = vpop.xlane.xlu0 %148 }
  0xce   :  { %v150_v1 = vrot.slane %v149_v0, 4 }
  0xd0   :  { %v151_v2 = vadd.f32 %v150_v1, %v149_v0 }
  0xd2   :  { %v152_v3 = vrot.slane %v151_v2, 2 }
  0xd4   :  { %v153_v4 = vadd.f32 %v152_v3, %v151_v2 }
  0xd6   :  { %v154_v5 = vrot.slane %v153_v4, 1 }
  0xd8   :  { %v155_v6 = vadd.f32 %v154_v5, %v153_v4 }
  0xda   :  { %186 = vpush %v155_v6 }
 0x10b   :  { %s187_s17 = spop %186 }
 0x10c   :  { %v157_v7 = vstv %s187_s17 }
 0x10d   :  { %159 = vst.msk [vmem:[#allocation3] sm:$0x1] %vm158_vm6, %v157_v7 }
 0x10e   :  { %213 = shalt.err (!%p210_p4)
}
 0x10f   :  { %s214_s22 = scalar_lea.hbm %s269_s2, 16 }
 0x110   :  { %p215_p5 = scmp.ne.s32.totalorder %s269_s2, %s214_s22  ;;  %p218_p6 = scmp.lt.u32.totalorder %s214_s22, %s269_s2 }
 0x112   :  { %p220_p7 = pnand %p218_p6, %p215_p5 }
 0x114   :  { %223 = shalt.err (!%p220_p7)
}
 0x115   :  { %169 = dma.vmem_to_hbm [thread:$0]  %s167_s16, 16, %s269_s2, [#allocation4]  }
 0x116   :  { %224 = dma.done.wait [#allocation4], 16  }
 0x117   :  { %225 = vsyncadd [#allocation4], 4294967280 }
 0x118   :  { %173 = vsyncpa [#allocation4], 1 }

</bundles_post_ra>
